<compile_context>
chip_gen: v6e
topology: v6e:2x2x1
jax: 0.10.0
libtpu: 0.0.40
codegen_flags: <defaults>
</compile_context>

<pallas_src>
import math

import jax
import jax.numpy as jnp
from jax.experimental import pallas as pl
from jax.experimental.pallas import tpu as pltpu


def patch_embed_kernel(x_ref, w_ref, pos_ref, gb_ref, o_ref):
    # x_ref:   (TM, Kp)   row tile of flattened patch vectors (K zero-padded)
    # w_ref:   (Kp, N)    flattened conv weight (rows zero-padded to Kp)
    # pos_ref: (TM, N)    row_embed + col_embed + conv bias, tiled to TM rows
    # gb_ref:  (2, N)     [gamma; beta]
    # o_ref:   (TM, N)
    y = jnp.dot(x_ref[...], w_ref[...], preferred_element_type=jnp.float32)
    y = y + pos_ref[...]

    # One-pass LayerNorm (sum / sum-of-squares), reductions kept in f32.
    # NOTE: E[y^2] - mean^2 is cancellation-prone for very large activations;
    # fine here, revert to two-pass if accuracy regressions appear.
    n = y.shape[-1]
    inv_n = 1.0 / n
    s = jnp.sum(y, axis=-1, keepdims=True)
    sq = jnp.sum(y * y, axis=-1, keepdims=True)
    mean = s * inv_n
    var = sq * inv_n - mean * mean
    y = (y - mean) * jax.lax.rsqrt(var + 1e-5)
    y = y * gb_ref[0:1, :] + gb_ref[1:2, :]
    o_ref[...] = y.astype(o_ref.dtype)


def patch_embed(x, conv_w, conv_b, row_embed, col_embed, ln_gamma, ln_beta,
                patch_size, *, mxu_dtype=None, out_dtype=None):
    """x: (B, C, H, W) float32, NCHW as in PyTorch.

    mxu_dtype: optionally cast the matmul operands (patches + weight) to e.g.
      jnp.bfloat16 for v6e/v7x MXU peak; accumulation stays f32.  Loosen the
      reference tolerance when enabling.
    out_dtype: output dtype (default x.dtype); bf16 halves output writeback.
    """
    B, C, H, W = x.shape
    P = patch_size
    Hp, Wp = H // P, W // P
    NP = Hp * Wp
    hidden = conv_w.shape[0]
    K = C * P * P
    M = B * NP
    out_dtype = x.dtype if out_dtype is None else out_dtype

    # --- glue: patchify (matches Conv2d kernel=stride=P semantics) ---
    # Patch-vector ordering is (c, kh, kw), same as conv_w.reshape(hidden, -1).
    xp = x.reshape(B, C, Hp, P, Wp, P)
    xp = jnp.transpose(xp, (0, 2, 4, 1, 3, 5)).reshape(M, K)

    # Pad contraction dim to a multiple of 128 (lane-dense loads, fuller MXU).
    Kp = ((K + 127) // 128) * 128
    w_flat = conv_w.reshape(hidden, K).T                      # (K, hidden)
    if Kp != K:
        xp = jnp.pad(xp, ((0, 0), (0, Kp - K)))
        w_flat = jnp.pad(w_flat, ((0, Kp - K), (0, 0)))

    if mxu_dtype is not None:
        xp = xp.astype(mxu_dtype)
        w_flat = w_flat.astype(mxu_dtype)

    # Positional embedding with conv bias fused in (f32; added post-matmul).
    row_idx = jnp.repeat(jnp.arange(Hp), Wp)                  # [0,0,..,1,1,..]
    col_idx = jnp.tile(jnp.arange(Wp), Hp)                    # [0,1,..,0,1,..]
    pos = (row_embed[row_idx] + col_embed[col_idx]
           + conv_b[None, :]).astype(jnp.float32)             # (NP, hidden)

    gb = jnp.stack([ln_gamma, ln_beta]).astype(jnp.float32)   # (2, hidden)

    # --- row-tile selection ---
    # tm must be a multiple of NP (tiles never straddle an image, so pos can
    # be tiled to tm rows with a constant index_map) and of 8 (sublane rule).
    lcm_np8 = NP * 8 // math.gcd(NP, 8)
    x_bytes = jnp.dtype(xp.dtype).itemsize
    out_bytes = jnp.dtype(out_dtype).itemsize
    per_row_bytes = (2 * Kp * x_bytes          # x tile, double-buffered
                     + 2 * hidden * out_bytes  # out tile, double-buffered
                     + 2 * hidden * 4          # pos tile (<= 2 buffers)
                     + 2 * hidden * 4)         # f32 LN intermediates headroom
    tile_budget = 16 << 20                     # leave headroom within 32 MiB
    rows_cap = max(lcm_np8, tile_budget // per_row_bytes)
    tm = min(rows_cap, 1024)                   # diminishing returns past ~1k
    if M >= 2 * lcm_np8:
        tm = min(tm, M // 2)                   # >= 2 grid steps (v7x 2 TCs)
    tm = max(lcm_np8, (tm // lcm_np8) * lcm_np8)

    # Pad M up to a multiple of tm (tail rows computed then sliced off).
    Mp = ((M + tm - 1) // tm) * tm
    if Mp != M:
        xp = jnp.pad(xp, ((0, Mp - M), (0, 0)))
    n_row_tiles = Mp // tm

    pos_tiled = jnp.tile(pos, (tm // NP, 1))   # (tm, hidden), constant block

    def row_map(i):
        return (i, 0)

    def const_map(i):
        return (0, 0)

    def run(single_buffer_constants):
        const_kw = ({"pipeline_mode": pl.Buffered(1)}
                    if single_buffer_constants else {})
        return pl.pallas_call(
            patch_embed_kernel,
            out_shape=jax.ShapeDtypeStruct((Mp, hidden), out_dtype),
            grid_spec=pltpu.PrefetchScalarGridSpec(
                num_scalar_prefetch=0,
                grid=(n_row_tiles,),
                in_specs=[
                    pl.BlockSpec((tm, Kp), row_map),
                    pl.BlockSpec((Kp, hidden), const_map, **const_kw),
                    pl.BlockSpec((tm, hidden), const_map, **const_kw),
                    pl.BlockSpec((2, hidden), const_map, **const_kw),
                ],
                out_specs=pl.BlockSpec((tm, hidden), row_map),
            ),
            compiler_params=pltpu.CompilerParams(
                dimension_semantics=("parallel",),
                vmem_limit_bytes=32 << 20),
        )(xp, w_flat, pos_tiled, gb)

    try:
        out = run(True)
    except Exception:
        # Fallback for jax versions that reject pipeline_mode=pl.Buffered(1)
        # on grid-invariant inputs; identical semantics, default buffering.
        out = run(False)

    if Mp != M:
        out = out[:M]
    return out.reshape(B, NP, hidden)


def patch_embed_ref(x, conv_w, conv_b, row_embed, col_embed, ln_gamma, ln_beta,
                    patch_size):
    """Pure-JAX reference matching the PyTorch forward."""
    B, C, H, W = x.shape
    P = patch_size
    Hp, Wp = H // P, W // P
    NP = Hp * Wp
    hidden = conv_w.shape[0]
    xp = x.reshape(B, C, Hp, P, Wp, P)
    xp = jnp.transpose(xp, (0, 2, 4, 1, 3, 5)).reshape(B, NP, C * P * P)
    y = xp @ conv_w.reshape(hidden, -1).T + conv_b[None, None, :]
    row_idx = jnp.repeat(jnp.arange(Hp), Wp)
    col_idx = jnp.tile(jnp.arange(Wp), Hp)
    pos = row_embed[row_idx] + col_embed[col_idx]
    y = y + pos[None]
    mean = jnp.mean(y, axis=-1, keepdims=True)
    var = jnp.mean((y - mean) ** 2, axis=-1, keepdims=True)
    y = (y - mean) / jnp.sqrt(var + 1e-5)
    return y * ln_gamma + ln_beta


if __name__ == "__main__":
    # module config
    input_size = 16
    patch_size = 4
    in_channels = 4
    hidden_size = 32
    batch = 2
    npd = input_size // patch_size  # num_patches_per_dim

    key = jax.random.PRNGKey(0)
    kx, kw, kb, kr, kc, kg, kbe = jax.random.split(key, 7)

    x = jax.random.normal(kx, (batch, in_channels, input_size, input_size),
                          dtype=jnp.float32)
    conv_w = jax.random.normal(
        kw, (hidden_size, in_channels, patch_size, patch_size),
        dtype=jnp.float32) * 0.05
    conv_b = jax.random.normal(kb, (hidden_size,), dtype=jnp.float32) * 0.05
    row_embed = jax.random.normal(kr, (npd, hidden_size),
                                  dtype=jnp.float32) * 0.05
    col_embed = jax.random.normal(kc, (npd, hidden_size),
                                  dtype=jnp.float32) * 0.05
    # nn.LayerNorm default init is ones/zeros; use nontrivial deterministic
    # values to exercise the affine path (semantics identical).
    ln_gamma = 1.0 + 0.1 * jax.random.normal(kg, (hidden_size,),
                                             dtype=jnp.float32)
    ln_beta = 0.1 * jax.random.normal(kbe, (hidden_size,), dtype=jnp.float32)

    out = patch_embed(x, conv_w, conv_b, row_embed, col_embed,
                      ln_gamma, ln_beta, patch_size)
    out = jax.block_until_ready(out)

    ref = patch_embed_ref(x, conv_w, conv_b, row_embed, col_embed,
                          ln_gamma, ln_beta, patch_size)
    assert out.shape == (batch, npd * npd, hidden_size)
    assert jnp.allclose(out, ref, atol=1e-4, rtol=1e-4), "mismatch vs reference"

    print("KERNEL_OK")
</pallas_src>

<mosaic_0001>
module attributes {stable_mosaic.version = 11 : i64} {
  func.func @patch_embed_kernel(%arg0: i32, %arg1: memref<16x128xf32, #tpu.memory_space<vmem>>, %arg2: memref<128x32xf32, #tpu.memory_space<vmem>>, %arg3: memref<16x32xf32, #tpu.memory_space<vmem>>, %arg4: memref<2x32xf32, #tpu.memory_space<vmem>>, %arg5: memref<16x32xf32, #tpu.memory_space<vmem>>) attributes {dimension_semantics = [#tpu.dimension_semantics<parallel>], iteration_bounds = array<i64: 2>, scalar_prefetch = 0 : i64, scratch_operands = 0 : i64, tpu.core_type = #tpu.core_type<tc>, window_params = [{transform_indices = @transform_0, window_bounds = array<i64: 16, 128>}, {pipeline_mode = #tpu.pipeline_mode<synchronous>, transform_indices = @transform_1, window_bounds = array<i64: 128, 32>}, {pipeline_mode = #tpu.pipeline_mode<synchronous>, transform_indices = @transform_2, window_bounds = array<i64: 16, 32>}, {pipeline_mode = #tpu.pipeline_mode<synchronous>, transform_indices = @transform_3, window_bounds = array<i64: 2, 32>}, {transform_indices = @transform_4, window_bounds = array<i64: 16, 32>}]} {
    %c0 = arith.constant 0 : index
    %c0_0 = arith.constant 0 : index
    %0 = vector.load %arg1[%c0, %c0_0] : memref<16x128xf32, #tpu.memory_space<vmem>>, vector<16x128xf32>
    %c0_1 = arith.constant 0 : index
    %c0_2 = arith.constant 0 : index
    %1 = vector.load %arg2[%c0_1, %c0_2] : memref<128x32xf32, #tpu.memory_space<vmem>>, vector<128x32xf32>
    %cst = arith.constant dense<0.000000e+00> : vector<16x32xf32>
    %2 = tpu.matmul %0, %1, %cst {dimension_numbers = #tpu.dot_dimension_numbers<[1], [0], [0], [1], [0, 0, 1, 1], [], []>} : vector<16x128xf32>, vector<128x32xf32>, vector<16x32xf32> -> vector<16x32xf32>
    %c0_3 = arith.constant 0 : index
    %c0_4 = arith.constant 0 : index
    %3 = vector.load %arg3[%c0_3, %c0_4] : memref<16x32xf32, #tpu.memory_space<vmem>>, vector<16x32xf32>
    %4 = arith.addf %2, %3 : vector<16x32xf32>
    %cst_5 = arith.constant dense<0.000000e+00> : vector<16xf32>
    %5 = vector.multi_reduction <add>, %4, %cst_5 [1] : vector<16x32xf32> to vector<16xf32>
    %6 = vector.shape_cast %5 : vector<16xf32> to vector<16x1xf32>
    %7 = arith.mulf %4, %4 : vector<16x32xf32>
    %cst_6 = arith.constant dense<0.000000e+00> : vector<16xf32>
    %8 = vector.multi_reduction <add>, %7, %cst_6 [1] : vector<16x32xf32> to vector<16xf32>
    %9 = vector.shape_cast %8 : vector<16xf32> to vector<16x1xf32>
    %cst_7 = arith.constant 3.125000e-02 : f32
    %10 = vector.broadcast %cst_7 : f32 to vector<16x1xf32>
    %11 = arith.mulf %6, %10 : vector<16x1xf32>
    %cst_8 = arith.constant 3.125000e-02 : f32
    %12 = vector.broadcast %cst_8 : f32 to vector<16x1xf32>
    %13 = arith.mulf %9, %12 : vector<16x1xf32>
    %14 = arith.mulf %11, %11 : vector<16x1xf32>
    %15 = arith.subf %13, %14 : vector<16x1xf32>
    %16 = vector.broadcast %11 : vector<16x1xf32> to vector<16x32xf32>
    %17 = arith.subf %4, %16 : vector<16x32xf32>
    %cst_9 = arith.constant 9.99999974E-6 : f32
    %18 = vector.broadcast %cst_9 : f32 to vector<16x1xf32>
    %19 = arith.addf %15, %18 : vector<16x1xf32>
    %20 = math.rsqrt %19 : vector<16x1xf32>
    %21 = vector.broadcast %20 : vector<16x1xf32> to vector<16x32xf32>
    %22 = arith.mulf %17, %21 : vector<16x32xf32>
    %c0_10 = arith.constant 0 : index
    %c0_11 = arith.constant 0 : index
    %23 = vector.load %arg4[%c0_10, %c0_11] : memref<2x32xf32, #tpu.memory_space<vmem>>, vector<1x32xf32>
    %24 = vector.broadcast %23 : vector<1x32xf32> to vector<16x32xf32>
    %25 = arith.mulf %22, %24 : vector<16x32xf32>
    %c1 = arith.constant 1 : index
    %c0_12 = arith.constant 0 : index
    %26 = vector.load %arg4[%c1, %c0_12] : memref<2x32xf32, #tpu.memory_space<vmem>>, vector<1x32xf32>
    %27 = vector.broadcast %26 : vector<1x32xf32> to vector<16x32xf32>
    %28 = arith.addf %25, %27 : vector<16x32xf32>
    %c0_13 = arith.constant 0 : index
    %c0_14 = arith.constant 0 : index
    %29 = vector.load %arg5[%c0_13, %c0_14] : memref<16x32xf32, #tpu.memory_space<vmem>>, vector<16x32xf32>
    tpu.vector_store %arg5[%c0_13, %c0_14], %28 {strides = array<i32>} : memref<16x32xf32, #tpu.memory_space<vmem>>, vector<16x32xf32>,
    return
  }
  func.func @transform_0(%arg0: i32) -> (i32, i32) {
    %c0_i32 = arith.constant 0 : i32
    %c0_i32_0 = arith.constant 0 : i32
    return %arg0, %c0_i32 : i32, i32
  }
  func.func @transform_1(%arg0: i32) -> (i32, i32) {
    %c0_i32 = arith.constant 0 : i32
    %c0_i32_0 = arith.constant 0 : i32
    %c0_i32_1 = arith.constant 0 : i32
    return %c0_i32, %c0_i32_0 : i32, i32
  }
  func.func @transform_2(%arg0: i32) -> (i32, i32) {
    %c0_i32 = arith.constant 0 : i32
    %c0_i32_0 = arith.constant 0 : i32
    %c0_i32_1 = arith.constant 0 : i32
    return %c0_i32, %c0_i32_0 : i32, i32
  }
  func.func @transform_3(%arg0: i32) -> (i32, i32) {
    %c0_i32 = arith.constant 0 : i32
    %c0_i32_0 = arith.constant 0 : i32
    %c0_i32_1 = arith.constant 0 : i32
    return %c0_i32, %c0_i32_0 : i32, i32
  }
  func.func @transform_4(%arg0: i32) -> (i32, i32) {
    %c0_i32 = arith.constant 0 : i32
    %c0_i32_0 = arith.constant 0 : i32
    return %arg0, %c0_i32 : i32, i32
  }
}

module attributes {stable_mosaic.version = 11 : i64} {
  func.func @patch_embed_kernel(%arg0: i32, %arg1: memref<16x128xf32, #tpu.memory_space<vmem>>, %arg2: memref<128x32xf32, #tpu.memory_space<vmem>>, %arg3: memref<16x32xf32, #tpu.memory_space<vmem>>, %arg4: memref<2x32xf32, #tpu.memory_space<vmem>>, %arg5: memref<16x32xf32, #tpu.memory_space<vmem>>) attributes {dimension_semantics = [#tpu.dimension_semantics<parallel>], iteration_bounds = array<i64: 2>, scalar_prefetch = 0 : i64, scratch_operands = 0 : i64, tpu.core_type = #tpu.core_type<tc>, window_params = [{transform_indices = @transform_0, window_bounds = array<i64: 16, 128>}, {pipeline_mode = #tpu.pipeline_mode<synchronous>, transform_indices = @transform_1, window_bounds = array<i64: 128, 32>}, {pipeline_mode = #tpu.pipeline_mode<synchronous>, transform_indices = @transform_2, window_bounds = array<i64: 16, 32>}, {pipeline_mode = #tpu.pipeline_mode<synchronous>, transform_indices = @transform_3, window_bounds = array<i64: 2, 32>}, {transform_indices = @transform_4, window_bounds = array<i64: 16, 32>}]} {
    %c0 = arith.constant 0 : index
    %c0_0 = arith.constant 0 : index
    %0 = vector.load %arg1[%c0, %c0_0] : memref<16x128xf32, #tpu.memory_space<vmem>>, vector<16x128xf32>
    %c0_1 = arith.constant 0 : index
    %c0_2 = arith.constant 0 : index
    %1 = vector.load %arg2[%c0_1, %c0_2] : memref<128x32xf32, #tpu.memory_space<vmem>>, vector<128x32xf32>
    %cst = arith.constant dense<0.000000e+00> : vector<16x32xf32>
    %2 = tpu.matmul %0, %1, %cst {dimension_numbers = #tpu.dot_dimension_numbers<[1], [0], [0], [1], [0, 0, 1, 1], [], []>} : vector<16x128xf32>, vector<128x32xf32>, vector<16x32xf32> -> vector<16x32xf32>
    %c0_3 = arith.constant 0 : index
    %c0_4 = arith.constant 0 : index
    %3 = vector.load %arg3[%c0_3, %c0_4] : memref<16x32xf32, #tpu.memory_space<vmem>>, vector<16x32xf32>
    %4 = arith.addf %2, %3 : vector<16x32xf32>
    %cst_5 = arith.constant dense<0.000000e+00> : vector<16xf32>
    %5 = vector.multi_reduction <add>, %4, %cst_5 [1] : vector<16x32xf32> to vector<16xf32>
    %6 = vector.shape_cast %5 : vector<16xf32> to vector<16x1xf32>
    %7 = arith.mulf %4, %4 : vector<16x32xf32>
    %cst_6 = arith.constant dense<0.000000e+00> : vector<16xf32>
    %8 = vector.multi_reduction <add>, %7, %cst_6 [1] : vector<16x32xf32> to vector<16xf32>
    %9 = vector.shape_cast %8 : vector<16xf32> to vector<16x1xf32>
    %cst_7 = arith.constant 3.125000e-02 : f32
    %10 = vector.broadcast %cst_7 : f32 to vector<16x1xf32>
    %11 = arith.mulf %6, %10 : vector<16x1xf32>
    %cst_8 = arith.constant 3.125000e-02 : f32
    %12 = vector.broadcast %cst_8 : f32 to vector<16x1xf32>
    %13 = arith.mulf %9, %12 : vector<16x1xf32>
    %14 = arith.mulf %11, %11 : vector<16x1xf32>
    %15 = arith.subf %13, %14 : vector<16x1xf32>
    %16 = vector.broadcast %11 : vector<16x1xf32> to vector<16x32xf32>
    %17 = arith.subf %4, %16 : vector<16x32xf32>
    %cst_9 = arith.constant 9.99999974E-6 : f32
    %18 = vector.broadcast %cst_9 : f32 to vector<16x1xf32>
    %19 = arith.addf %15, %18 : vector<16x1xf32>
    %20 = math.rsqrt %19 : vector<16x1xf32>
    %21 = vector.broadcast %20 : vector<16x1xf32> to vector<16x32xf32>
    %22 = arith.mulf %17, %21 : vector<16x32xf32>
    %c0_10 = arith.constant 0 : index
    %c0_11 = arith.constant 0 : index
    %23 = vector.load %arg4[%c0_10, %c0_11] : memref<2x32xf32, #tpu.memory_space<vmem>>, vector<1x32xf32>
    %24 = vector.broadcast %23 : vector<1x32xf32> to vector<16x32xf32>
    %25 = arith.mulf %22, %24 : vector<16x32xf32>
    %c1 = arith.constant 1 : index
    %c0_12 = arith.constant 0 : index
    %26 = vector.load %arg4[%c1, %c0_12] : memref<2x32xf32, #tpu.memory_space<vmem>>, vector<1x32xf32>
    %27 = vector.broadcast %26 : vector<1x32xf32> to vector<16x32xf32>
    %28 = arith.addf %25, %27 : vector<16x32xf32>
    %c0_13 = arith.constant 0 : index
    %c0_14 = arith.constant 0 : index
    %29 = vector.load %arg5[%c0_13, %c0_14] : memref<16x32xf32, #tpu.memory_space<vmem>>, vector<16x32xf32>
    tpu.vector_store %arg5[%c0_13, %c0_14], %28 {strides = array<i32>} : memref<16x32xf32, #tpu.memory_space<vmem>>, vector<16x32xf32>,
    return
  }
  func.func @transform_0(%arg0: i32) -> (i32, i32) {
    %c0_i32 = arith.constant 0 : i32
    %c0_i32_0 = arith.constant 0 : i32
    return %arg0, %c0_i32 : i32, i32
  }
  func.func @transform_1(%arg0: i32) -> (i32, i32) {
    %c0_i32 = arith.constant 0 : i32
    %c0_i32_0 = arith.constant 0 : i32
    %c0_i32_1 = arith.constant 0 : i32
    return %c0_i32, %c0_i32_0 : i32, i32
  }
  func.func @transform_2(%arg0: i32) -> (i32, i32) {
    %c0_i32 = arith.constant 0 : i32
    %c0_i32_0 = arith.constant 0 : i32
    %c0_i32_1 = arith.constant 0 : i32
    return %c0_i32, %c0_i32_0 : i32, i32
  }
  func.func @transform_3(%arg0: i32) -> (i32, i32) {
    %c0_i32 = arith.constant 0 : i32
    %c0_i32_0 = arith.constant 0 : i32
    %c0_i32_1 = arith.constant 0 : i32
    return %c0_i32, %c0_i32_0 : i32, i32
  }
  func.func @transform_4(%arg0: i32) -> (i32, i32) {
    %c0_i32 = arith.constant 0 : i32
    %c0_i32_0 = arith.constant 0 : i32
    return %arg0, %c0_i32 : i32, i32
  }
}

</mosaic_0001>

<bundles_post_ra>
// kernel: tpu_custom_call.1
= control target key start
LH: loop header
LB: loop body
LE: loop exit
PB: predicated region body
PF: predicated region fallthrough
CT: control target
= control target key end

     0   :  { %9 = vsyncpa [#allocation3], 0  ;;  %s791_s0 = inlined_call_operand.vmem [shape: f32[32,128], index: 0, kind: input, shape index: {}]   ;;  %s792_s1 = inlined_call_operand.vmem [shape: f32[128,32], index: 1, kind: input, shape index: {}]   ;;  %s793_s2 = inlined_call_operand.vmem [shape: f32[16,32], index: 2, kind: input, shape index: {}]   ;;  %s794_s3 = inlined_call_operand.vmem [shape: f32[2,32], index: 3, kind: input, shape index: {}]   ;;  %s795_s4 = inlined_call_operand.hbm [shape: f32[32,32], index: 4, kind: output, shape index: {}]  }
   0x1   :  { %11 = vsyncpa [#allocation3 + $0x1], 0  ;;  %s620_s15 = smov 0   ;;  %s622_s16 = smov 0  }
   0x2   :  { %s624_s17 = smov 0   ;;  %s626_s18 = smov 0  }
   0x3 LB: > { %s641_s19 = sadd.s32 4294967295, %s590_s18   ;;  %s417_s20 = sadd.s32 4294967294, %s590_s18   ;;  %s590_s18 = sphi %s626_s18, %s801_s18   ;;  %s586_s17 = sphi %s624_s17, %s800_s17   ;;  %s582_s16 = sphi %s622_s16, %s799_s16   ;;  %s578_s15 = sphi %s620_s15, %s798_s15  }
   0x4   : > { %s645_s21 = sadd.s32 1, %s590_s18   ;;  %s113_s22 = sadd.s32 1, %s586_s17 }
   0x5   : > { %s110_s23 = ssub.s32 %s590_s18, %s645_s21  ;;  %p123_p0 = scmp.ne.s32.totalorder %s586_s17, %s582_s16 }
   0x6   : > { %p111_p1 = scmp.eq.s32.totalorder %s110_s23, 0  ;;  %p124_p2 = scmp.eq.s32.totalorder %s641_s19, 1 }
   0x7   : > { %p129_p3 = scmp.ne.s32.totalorder %s582_s16, %s578_s15  ;;  %p130_p4 = scmp.eq.s32.totalorder %s417_s20, 1 }
   0x8   : > { %s656_s24 = scalar_select %p111_p1, %s586_s17, %s113_s22  }
   0x9   : > { %p658_p5 = por %p124_p2, %p123_p0  ;;  %p662_p6 = por %p130_p4, %p129_p3 }
   0xa   : > { %p420_p7 = scmp.ge.s32.totalorder %s590_s18, 1  ;;  %p166_p8 = scmp.lt.s32.totalorder %s590_s18, 3 }
   0xc   : > { %p167_p9 = pnand %p420_p7, %p166_p8 }
   0xd   : > { %s422_s5 = sshll.u32 (!%p167_p9), %s641_s19, 1  ;;  %s431_s14 = sshll.u32 (!%p167_p9), %s641_s19, 8 }
   0xe   : > { %170 = sbr.rel (%p167_p9) target bundleno = 434 (0x1b2), region = 36  ;;  %p193_p10 = scmp.lt.s32.totalorder (!%p167_p9), %s422_s5, 3 }
   0xf   : > { %s746_s29 = scalar_lea.hbm (!%p167_p9), %s795_s4, %s431_s14 }
  0x13   : > { %v216_v0 = vld [vmem:[%s792_s1 + $0x78] sm:$0xff]  ;;  %v215_v1 = vld [vmem:[%s792_s1 + $0x70] sm:$0xff]  ;;  %v214_v2 = vld [vmem:[%s792_s1 + $0x68] sm:$0xff]  ;;  %s803_s5 = smov (!%p193_p10, %s422_s5), 3  ;;  %vm294_vm0 = vcmask 261120  }
  0x14   : > { %450 = vmatprep.subr.mxu0 %v216_v0  ;;  %v213_v3 = vld [vmem:[%s792_s1 + $0x60] sm:$0xff]  ;;  %s423_s10 = sshll.u32 %s803_s5, 3  ;;  %v212_v4 = vld [vmem:[%s792_s1 + $0x58] sm:$0xff]  ;;  %v211_v6 = vld [vmem:[%s792_s1 + $0x50] sm:$0xff]  ;;  %s592_s5 = smov [#allocation2]  }
  0x15   : > { %451 = vmatpush3.msra.mxu0 %v216_v0  ;;  %s687_s20 = scalar_lea.vmem %s791_s0, %s423_s10  ;;  %v210_v7 = vld [vmem:[%s792_s1 + $0x48] sm:$0xff]  ;;  %v209_v8 = vld [vmem:[%s792_s1 + $0x40] sm:$0xff]  ;;  %v208_v9 = vld [vmem:[%s792_s1 + $0x38] sm:$0xff]  ;;  %s534_s6 = sshll.u32 %s592_s5, 4  ;;  %s535_s6 = int_to_ptr.vmem [resolvable:$false] %s534_s6 }
  0x16   : > { %452 = vmatprep.subr.mxu0 %v215_v1  ;;  %v199_v5 = vld [vmem:[%s687_s20] sm:$0xff]  ;;  %v207_v10 = vld [vmem:[%s792_s1 + $0x30] sm:$0xff]  ;;  %v206_v11 = vld [vmem:[%s792_s1 + $0x28] sm:$0xff]  ;;  %s536_s7 = scalar_lea.vmem %s535_s6, 512 }
  0x17   : > { %453 = vmatpush3.msra.mxu0 %v215_v1  ;;  %482 = vmatprep.mubr.f32.mxu0 %v199_v5  ;;  %v205_v12 = vld [vmem:[%s792_s1 + $0x20] sm:$0xff]  ;;  %v204_v13 = vld [vmem:[%s792_s1 + $0x18] sm:$0xff]  ;;  %v203_v14 = vld [vmem:[%s792_s1 + $0x10] sm:$0xff] }
  0x18   : > { %454 = vmatprep.subr.mxu0 %v214_v2  ;;  %v202_v15 = vld [vmem:[%s792_s1 + $0x8] sm:$0xff]  ;;  %v201_v16 = vld [vmem:[%s792_s1] sm:$0xff] }
  0x19   : > { %455 = vmatpush3.msra.mxu0 %v214_v2  ;;  %v200_v17 = vld [vmem:[%s687_s20 + $0x8] sm:$0xff]  ;;  %v217_v20 = vld [vmem:[%s793_s2] sm:$0xff]  ;;  %s189_s20 = sand.u32 1, %s582_s16  }
  0x1a   : > { %456 = vmatprep.subr.mxu0 %v213_v3  ;;  %v218_v18 = vld [vmem:[%s793_s2 + $0x8] sm:$0xff]  ;;  %v424_v46 = vld [vmem:[%s794_s3] ss:$0 sm:$0xff]  ;;  %s421_s11 = sshll.u32 %s189_s20, 4  ;;  %v425_v48 = vld [vmem:[%s794_s3 + $0x1] ss:$0 sm:$0xff] }
  0x1b   : > { %457 = vmatpush3.msra.mxu0 %v213_v3  ;;  %s191_s22 = scalar_lea.vmem [#allocation2], %s421_s11  ;;  %s751_s30 = scalar_lea.sflag [#allocation3], %s189_s20 }
  0x1c   : > { %458 = vmatprep.subr.mxu0 %v212_v4  ;;  %s355_s23 = sshll.u32 %s191_s22, 4  ;;  %s748_s23 = int_to_ptr.vmem [resolvable:$true] %s355_s23 }
  0x1d   : > { %459 = vmatpush3.msra.mxu0 %v212_v4  ;;  %s530_s19 = scalar_lea.vmem %s748_s23, 256  ;;  %p537_p0 = scmp.lt.s32.totalorder %s748_s23, %s535_s6 }
  0x1e   : > { %460 = vmatprep.subr.mxu0 %v211_v6  ;;  %p531_p11 = scmp.ne.s32.totalorder %s748_s23, %s530_s19  ;;  %p538_p1 = scmp.lt.s32.totalorder %s536_s7, %s530_s19 }
  0x1f   : > { %461 = vmatpush3.msra.mxu0 %v211_v6 }
  0x20   : > { %462 = vmatprep.subr.mxu0 %v210_v7  ;;  %p532_p12 = pnand %p531_p11, %p658_p5  ;;  %p539_p2 = por %p538_p1, %p537_p0 }
  0x21   : > { %463 = vmatpush3.msra.mxu0 %v210_v7 }
  0x22   : > { %464 = vmatprep.subr.mxu0 %v209_v8  ;;  %p533_p13 = pneg %p532_p12 }
  0x23   : > { %465 = vmatpush3.msra.mxu0 %v209_v8 }
  0x24   : > { %466 = vmatprep.subr.mxu0 %v208_v9  ;;  %p540_p3 = pnand %p539_p2, %p533_p13 }
  0x25   : > { %467 = vmatpush3.msra.mxu0 %v208_v9 }
  0x26   : > { %468 = vmatprep.subr.mxu0 %v207_v10 }
  0x27   : > { %469 = vmatpush3.msra.mxu0 %v207_v10 }
  0x28   : > { %470 = vmatprep.subr.mxu0 %v206_v11 }
  0x29   : > { %471 = vmatpush3.msra.mxu0 %v206_v11 }
  0x2a   : > { %472 = vmatprep.subr.mxu0 %v205_v12 }
  0x2b   : > { %473 = vmatpush3.msra.mxu0 %v205_v12 }
  0x2c   : > { %474 = vmatprep.subr.mxu0 %v204_v13 }
  0x2d   : > { %475 = vmatpush3.msra.mxu0 %v204_v13 }
  0x2e   : > { %476 = vmatprep.subr.mxu0 %v203_v14 }
  0x2f   : > { %477 = vmatpush3.msra.mxu0 %v203_v14 }
  0x30   : > { %478 = vmatprep.subr.mxu0 %v202_v15 }
  0x31   : > { %479 = vmatpush3.msra.mxu0 %v202_v15 }
  0x32   : > { %480 = vmatprep.subr.mxu0 %v201_v16 }
  0x33   : > { %481 = vmatpush3.msra.mxu0 %v201_v16 }
  0x34   : > { %483 = vmatmul.mubr.f32.vlgmr.msra.gmra.mxu0 %v200_v17 }
  0xf4   : > { %v484_v19 = vpop.f32.mrf.mxu0 }
  0xf5   : > { %v291_v22 = vadd.f32 %v484_v19, %v218_v18 }
  0xf6   : > { %v285_v21 = vpop.f32.mrf.mxu0 }
  0xf7   : > { %v286_v23 = vadd.f32 %v285_v21, %v217_v20  ;;  %v302_v27 = vmul.f32 %v291_v22, %v291_v22  ;;  %v298_v28 = vsel %vm294_vm0, %v291_v22, 0.0 }
  0xf9   : > { %v295_v24 = vsel %vm294_vm0, %v286_v23, 0.0  ;;  %v301_v25 = vmul.f32 %v286_v23, %v286_v23  ;;  %v306_v29 = vsel %vm294_vm0, %v302_v27, 0.0 }
  0xfa   : > { %296 = vadd.xlane.f32.xlu0 %v295_v24 }
  0xfb   : > { %v303_v26 = vsel %vm294_vm0, %v301_v25, 0.0 }
  0xfc   : > { %304 = vadd.xlane.f32.xlu1 %v303_v26 }
  0xfe   : > { %299 = vadd.xlane.f32.xlu0 %v298_v28 }
 0x100   : > { %307 = vadd.xlane.f32.xlu1 %v306_v29 }
 0x183   : > { %v297_v30 = vpop.xlane.xlu0 %296 }
 0x184   : > { %v309_v31 = vmul.f32 0.03125, %v297_v30 }
 0x185   : > { %v305_v32 = vpop.xlane.xlu1 %304 }
 0x186   : > { %v313_v33 = vmul.f32 %v309_v31, %v309_v31  ;;  %v311_v34 = vmul.f32 0.03125, %v305_v32  ;;  %v317_v44 = vsub.f32 %v286_v23, %v309_v31 }
 0x187   : > { %v300_v35 = vpop.xlane.xlu0 %299 }
 0x188   : > { %v315_v36 = vsub.f32 %v311_v34, %v313_v33  ;;  %v310_v37 = vmul.f32 0.03125, %v300_v35 }
 0x189   : > { %v308_v38 = vpop.xlane.xlu1 %307 }
 0x18a   : > { %v319_v39 = vadd.f32 1e-05, %v315_v36  ;;  %v314_v40 = vmul.f32 %v310_v37, %v310_v37  ;;  %v312_v41 = vmul.f32 0.03125, %v308_v38  ;;  %v318_v49 = vsub.f32 %v291_v22, %v310_v37 }
 0x18c   : > { %526 = vrsqrt.f32 %v319_v39  ;;  %v316_v42 = vsub.f32 %v312_v41, %v314_v40 }
 0x18e   : > { %v320_v43 = vadd.f32 1e-05, %v316_v42 }
 0x190   : > { %528 = vrsqrt.f32 %v320_v43 }
 0x199   : > { %v527_v45 = vpop.eup %526 }
 0x19a   : > { %v323_v47 = vmul.f32 %v527_v45, %v317_v44 }
 0x19c   : > { %v330_v50 = vmul.f32 %v424_v46, %v323_v47 }
 0x19d   : > { %v529_v51 = vpop.eup %528 }
 0x19e   : > { %v324_v52 = vmul.f32 %v529_v51, %v318_v49  ;;  %v337_v53 = vadd.f32 %v425_v48, %v330_v50 }
 0x1a0   : > { %v331_v54 = vmul.f32 %v424_v46, %v324_v52  ;;  %339 = vst.msk [vmem:[%s191_s22] sm:$0xff] %vm294_vm0, %v337_v53 }
 0x1a2   : > { %v338_v55 = vadd.f32 %v425_v48, %v331_v54 }
 0x1a4   : > { %340 = vst.msk [vmem:[%s191_s22 + $0x8] sm:$0xff] %vm294_vm0, %v338_v55 }
 0x1a5   : > { %543 = shalt.err (!%p540_p3)
}
 0x1a6   : > { %s544_s8 = scalar_lea.hbm %s746_s29, 256  ;;  %s548_s10 = scalar_lea.hbm %s795_s4, 512 }
 0x1a7   : > { %p545_p4 = scmp.ne.s32.totalorder %s746_s29, %s544_s8  ;;  %p549_p9 = scmp.lt.s32.totalorder %s746_s29, %s795_s4 }
 0x1a8   : > { %p550_p10 = scmp.lt.s32.totalorder %s548_s10, %s544_s8 }
 0x1a9   : > { %p546_p7 = pnand %p545_p4, %p658_p5 }
 0x1aa   : > { %p551_p11 = por %p550_p10, %p549_p9 }
 0x1ab   : > { %p547_p8 = pneg %p546_p7 }
 0x1ad   : > { %p552_p12 = pnand %p551_p11, %p547_p8 }
 0x1af   : > { %555 = shalt.err (!%p552_p12)
}
 0x1b0   : > { %s593_s13 = smov 128   ;;  %s594_s14 = smov 8  }
 0x1b1   : > { %485 = dma.vmem_to_hbm [thread:$0]  (%p658_p5), %s748_s23, 256, %s746_s29, %s751_s30, %s593_s13, %s593_s13, %s594_s14  }
 0x1b2 PF: > { %p491_p13 = scmp.ge.s32.totalorder %s590_s18, 2  ;;  %s370_s22 = sand.u32 1, %s578_s15  }
 0x1b3   : > { %s371_s27 = scalar_lea.sflag [#allocation3], %s370_s22 }
 0x1b4   : > { %p488_p0 = pnand %p491_p13, %p662_p6 }
 0x1b6   : > { %p489_p1 = pneg %p488_p0 }
 0x1b8   : > { %573 = dma.done.wait (%p489_p1), %s371_s27, 256  }
 0x1b9   : > { %575 = vsyncadd (%p489_p1), %s371_s27, 4294967040  ;;  %p14_p2 = scmp.ge.s32.totalorder %s645_s21, 4   ;;  %s798_s15 = smov %s582_s16 }
 0x1ba   : > { %s799_s16 = smov %s586_s17  ;;  %s800_s17 = smov %s656_s24 }
 0x1bb   : > { %s801_s18 = smov %s645_s21  ;;  %16 = sbr.rel (!%p14_p2) target bundleno = 3 (0x3), region = 71 }
 0x1c0   :  { %376 = vsyncpa [#allocation3], 1 }
 0x1c1   :  { %378 = vsyncpa [#allocation3 + $0x1], 1 }

// kernel: tpu_custom_call.1
= control target key start
LH: loop header
LB: loop body
LE: loop exit
PB: predicated region body
PF: predicated region fallthrough
CT: control target
= control target key end

     0   :  { %9 = vsyncpa [#allocation3], 0  ;;  %s791_s0 = inlined_call_operand.vmem [shape: f32[32,128], index: 0, kind: input, shape index: {}]   ;;  %s792_s1 = inlined_call_operand.vmem [shape: f32[128,32], index: 1, kind: input, shape index: {}]   ;;  %s793_s2 = inlined_call_operand.vmem [shape: f32[16,32], index: 2, kind: input, shape index: {}]   ;;  %s794_s3 = inlined_call_operand.vmem [shape: f32[2,32], index: 3, kind: input, shape index: {}]   ;;  %s795_s4 = inlined_call_operand.hbm [shape: f32[32,32], index: 4, kind: output, shape index: {}]  }
   0x1   :  { %11 = vsyncpa [#allocation3 + $0x1], 0  ;;  %s620_s15 = smov 0   ;;  %s622_s16 = smov 0  }
   0x2   :  { %s624_s17 = smov 0   ;;  %s626_s18 = smov 0  }
   0x3 LB: > { %s641_s19 = sadd.s32 4294967295, %s590_s18   ;;  %s417_s20 = sadd.s32 4294967294, %s590_s18   ;;  %s590_s18 = sphi %s626_s18, %s801_s18   ;;  %s586_s17 = sphi %s624_s17, %s800_s17   ;;  %s582_s16 = sphi %s622_s16, %s799_s16   ;;  %s578_s15 = sphi %s620_s15, %s798_s15  }
   0x4   : > { %s645_s21 = sadd.s32 1, %s590_s18   ;;  %s113_s22 = sadd.s32 1, %s586_s17 }
   0x5   : > { %s110_s23 = ssub.s32 %s590_s18, %s645_s21  ;;  %p123_p0 = scmp.ne.s32.totalorder %s586_s17, %s582_s16 }
   0x6   : > { %p111_p1 = scmp.eq.s32.totalorder %s110_s23, 0  ;;  %p124_p2 = scmp.eq.s32.totalorder %s641_s19, 1 }
   0x7   : > { %p129_p3 = scmp.ne.s32.totalorder %s582_s16, %s578_s15  ;;  %p130_p4 = scmp.eq.s32.totalorder %s417_s20, 1 }
   0x8   : > { %s656_s24 = scalar_select %p111_p1, %s586_s17, %s113_s22  }
   0x9   : > { %p658_p5 = por %p124_p2, %p123_p0  ;;  %p662_p6 = por %p130_p4, %p129_p3 }
   0xa   : > { %p420_p7 = scmp.ge.s32.totalorder %s590_s18, 1  ;;  %p166_p8 = scmp.lt.s32.totalorder %s590_s18, 3 }
   0xc   : > { %p167_p9 = pnand %p420_p7, %p166_p8 }
   0xd   : > { %s422_s5 = sshll.u32 (!%p167_p9), %s641_s19, 1  ;;  %s431_s14 = sshll.u32 (!%p167_p9), %s641_s19, 8 }
   0xe   : > { %170 = sbr.rel (%p167_p9) target bundleno = 434 (0x1b2), region = 36  ;;  %p193_p10 = scmp.lt.s32.totalorder (!%p167_p9), %s422_s5, 3 }
   0xf   : > { %s746_s29 = scalar_lea.hbm (!%p167_p9), %s795_s4, %s431_s14 }
  0x13   : > { %v216_v0 = vld [vmem:[%s792_s1 + $0x78] sm:$0xff]  ;;  %v215_v1 = vld [vmem:[%s792_s1 + $0x70] sm:$0xff]  ;;  %v214_v2 = vld [vmem:[%s792_s1 + $0x68] sm:$0xff]  ;;  %s803_s5 = smov (!%p193_p10, %s422_s5), 3  ;;  %vm294_vm0 = vcmask 261120  }
  0x14   : > { %450 = vmatprep.subr.mxu0 %v216_v0  ;;  %v213_v3 = vld [vmem:[%s792_s1 + $0x60] sm:$0xff]  ;;  %s423_s10 = sshll.u32 %s803_s5, 3  ;;  %v212_v4 = vld [vmem:[%s792_s1 + $0x58] sm:$0xff]  ;;  %v211_v6 = vld [vmem:[%s792_s1 + $0x50] sm:$0xff]  ;;  %s592_s5 = smov [#allocation2]  }
  0x15   : > { %451 = vmatpush3.msra.mxu0 %v216_v0  ;;  %s687_s20 = scalar_lea.vmem %s791_s0, %s423_s10  ;;  %v210_v7 = vld [vmem:[%s792_s1 + $0x48] sm:$0xff]  ;;  %v209_v8 = vld [vmem:[%s792_s1 + $0x40] sm:$0xff]  ;;  %v208_v9 = vld [vmem:[%s792_s1 + $0x38] sm:$0xff]  ;;  %s534_s6 = sshll.u32 %s592_s5, 4  ;;  %s535_s6 = int_to_ptr.vmem [resolvable:$false] %s534_s6 }
  0x16   : > { %452 = vmatprep.subr.mxu0 %v215_v1  ;;  %v199_v5 = vld [vmem:[%s687_s20] sm:$0xff]  ;;  %v207_v10 = vld [vmem:[%s792_s1 + $0x30] sm:$0xff]  ;;  %v206_v11 = vld [vmem:[%s792_s1 + $0x28] sm:$0xff]  ;;  %s536_s7 = scalar_lea.vmem %s535_s6, 512 }
  0x17   : > { %453 = vmatpush3.msra.mxu0 %v215_v1  ;;  %482 = vmatprep.mubr.f32.mxu0 %v199_v5  ;;  %v205_v12 = vld [vmem:[%s792_s1 + $0x20] sm:$0xff]  ;;  %v204_v13 = vld [vmem:[%s792_s1 + $0x18] sm:$0xff]  ;;  %v203_v14 = vld [vmem:[%s792_s1 + $0x10] sm:$0xff] }
  0x18   : > { %454 = vmatprep.subr.mxu0 %v214_v2  ;;  %v202_v15 = vld [vmem:[%s792_s1 + $0x8] sm:$0xff]  ;;  %v201_v16 = vld [vmem:[%s792_s1] sm:$0xff] }
  0x19   : > { %455 = vmatpush3.msra.mxu0 %v214_v2  ;;  %v200_v17 = vld [vmem:[%s687_s20 + $0x8] sm:$0xff]  ;;  %v217_v20 = vld [vmem:[%s793_s2] sm:$0xff]  ;;  %s189_s20 = sand.u32 1, %s582_s16  }
  0x1a   : > { %456 = vmatprep.subr.mxu0 %v213_v3  ;;  %v218_v18 = vld [vmem:[%s793_s2 + $0x8] sm:$0xff]  ;;  %v424_v46 = vld [vmem:[%s794_s3] ss:$0 sm:$0xff]  ;;  %s421_s11 = sshll.u32 %s189_s20, 4  ;;  %v425_v48 = vld [vmem:[%s794_s3 + $0x1] ss:$0 sm:$0xff] }
  0x1b   : > { %457 = vmatpush3.msra.mxu0 %v213_v3  ;;  %s191_s22 = scalar_lea.vmem [#allocation2], %s421_s11  ;;  %s751_s30 = scalar_lea.sflag [#allocation3], %s189_s20 }
  0x1c   : > { %458 = vmatprep.subr.mxu0 %v212_v4  ;;  %s355_s23 = sshll.u32 %s191_s22, 4  ;;  %s748_s23 = int_to_ptr.vmem [resolvable:$true] %s355_s23 }
  0x1d   : > { %459 = vmatpush3.msra.mxu0 %v212_v4  ;;  %s530_s19 = scalar_lea.vmem %s748_s23, 256  ;;  %p537_p0 = scmp.lt.s32.totalorder %s748_s23, %s535_s6 }
  0x1e   : > { %460 = vmatprep.subr.mxu0 %v211_v6  ;;  %p531_p11 = scmp.ne.s32.totalorder %s748_s23, %s530_s19  ;;  %p538_p1 = scmp.lt.s32.totalorder %s536_s7, %s530_s19 }
  0x1f   : > { %461 = vmatpush3.msra.mxu0 %v211_v6 }
  0x20   : > { %462 = vmatprep.subr.mxu0 %v210_v7  ;;  %p532_p12 = pnand %p531_p11, %p658_p5  ;;  %p539_p2 = por %p538_p1, %p537_p0 }
  0x21   : > { %463 = vmatpush3.msra.mxu0 %v210_v7 }
  0x22   : > { %464 = vmatprep.subr.mxu0 %v209_v8  ;;  %p533_p13 = pneg %p532_p12 }
  0x23   : > { %465 = vmatpush3.msra.mxu0 %v209_v8 }
  0x24   : > { %466 = vmatprep.subr.mxu0 %v208_v9  ;;  %p540_p3 = pnand %p539_p2, %p533_p13 }
  0x25   : > { %467 = vmatpush3.msra.mxu0 %v208_v9 }
  0x26   : > { %468 = vmatprep.subr.mxu0 %v207_v10 }
  0x27   : > { %469 = vmatpush3.msra.mxu0 %v207_v10 }
  0x28   : > { %470 = vmatprep.subr.mxu0 %v206_v11 }
  0x29   : > { %471 = vmatpush3.msra.mxu0 %v206_v11 }
  0x2a   : > { %472 = vmatprep.subr.mxu0 %v205_v12 }
  0x2b   : > { %473 = vmatpush3.msra.mxu0 %v205_v12 }
  0x2c   : > { %474 = vmatprep.subr.mxu0 %v204_v13 }
  0x2d   : > { %475 = vmatpush3.msra.mxu0 %v204_v13 }
  0x2e   : > { %476 = vmatprep.subr.mxu0 %v203_v14 }
  0x2f   : > { %477 = vmatpush3.msra.mxu0 %v203_v14 }
  0x30   : > { %478 = vmatprep.subr.mxu0 %v202_v15 }
  0x31   : > { %479 = vmatpush3.msra.mxu0 %v202_v15 }
  0x32   : > { %480 = vmatprep.subr.mxu0 %v201_v16 }
  0x33   : > { %481 = vmatpush3.msra.mxu0 %v201_v16 }
  0x34   : > { %483 = vmatmul.mubr.f32.vlgmr.msra.gmra.mxu0 %v200_v17 }
  0xf4   : > { %v484_v19 = vpop.f32.mrf.mxu0 }
  0xf5   : > { %v291_v22 = vadd.f32 %v484_v19, %v218_v18 }
  0xf6   : > { %v285_v21 = vpop.f32.mrf.mxu0 }
  0xf7   : > { %v286_v23 = vadd.f32 %v285_v21, %v217_v20  ;;  %v302_v27 = vmul.f32 %v291_v22, %v291_v22  ;;  %v298_v28 = vsel %vm294_vm0, %v291_v22, 0.0 }
  0xf9   : > { %v295_v24 = vsel %vm294_vm0, %v286_v23, 0.0  ;;  %v301_v25 = vmul.f32 %v286_v23, %v286_v23  ;;  %v306_v29 = vsel %vm294_vm0, %v302_v27, 0.0 }
  0xfa   : > { %296 = vadd.xlane.f32.xlu0 %v295_v24 }
  0xfb   : > { %v303_v26 = vsel %vm294_vm0, %v301_v25, 0.0 }
  0xfc   : > { %304 = vadd.xlane.f32.xlu1 %v303_v26 }
  0xfe   : > { %299 = vadd.xlane.f32.xlu0 %v298_v28 }
 0x100   : > { %307 = vadd.xlane.f32.xlu1 %v306_v29 }
 0x183   : > { %v297_v30 = vpop.xlane.xlu0 %296 }
 0x184   : > { %v309_v31 = vmul.f32 0.03125, %v297_v30 }
 0x185   : > { %v305_v32 = vpop.xlane.xlu1 %304 }
 0x186   : > { %v313_v33 = vmul.f32 %v309_v31, %v309_v31  ;;  %v311_v34 = vmul.f32 0.03125, %v305_v32  ;;  %v317_v44 = vsub.f32 %v286_v23, %v309_v31 }
 0x187   : > { %v300_v35 = vpop.xlane.xlu0 %299 }
 0x188   : > { %v315_v36 = vsub.f32 %v311_v34, %v313_v33  ;;  %v310_v37 = vmul.f32 0.03125, %v300_v35 }
 0x189   : > { %v308_v38 = vpop.xlane.xlu1 %307 }
 0x18a   : > { %v319_v39 = vadd.f32 1e-05, %v315_v36  ;;  %v314_v40 = vmul.f32 %v310_v37, %v310_v37  ;;  %v312_v41 = vmul.f32 0.03125, %v308_v38  ;;  %v318_v49 = vsub.f32 %v291_v22, %v310_v37 }
 0x18c   : > { %526 = vrsqrt.f32 %v319_v39  ;;  %v316_v42 = vsub.f32 %v312_v41, %v314_v40 }
 0x18e   : > { %v320_v43 = vadd.f32 1e-05, %v316_v42 }
 0x190   : > { %528 = vrsqrt.f32 %v320_v43 }
 0x199   : > { %v527_v45 = vpop.eup %526 }
 0x19a   : > { %v323_v47 = vmul.f32 %v527_v45, %v317_v44 }
 0x19c   : > { %v330_v50 = vmul.f32 %v424_v46, %v323_v47 }
 0x19d   : > { %v529_v51 = vpop.eup %528 }
 0x19e   : > { %v324_v52 = vmul.f32 %v529_v51, %v318_v49  ;;  %v337_v53 = vadd.f32 %v425_v48, %v330_v50 }
 0x1a0   : > { %v331_v54 = vmul.f32 %v424_v46, %v324_v52  ;;  %339 = vst.msk [vmem:[%s191_s22] sm:$0xff] %vm294_vm0, %v337_v53 }
 0x1a2   : > { %v338_v55 = vadd.f32 %v425_v48, %v331_v54 }
 0x1a4   : > { %340 = vst.msk [vmem:[%s191_s22 + $0x8] sm:$0xff] %vm294_vm0, %v338_v55 }
 0x1a5   : > { %543 = shalt.err (!%p540_p3)
}
 0x1a6   : > { %s544_s8 = scalar_lea.hbm %s746_s29, 256  ;;  %s548_s10 = scalar_lea.hbm %s795_s4, 512 }
 0x1a7   : > { %p545_p4 = scmp.ne.s32.totalorder %s746_s29, %s544_s8  ;;  %p549_p9 = scmp.lt.s32.totalorder %s746_s29, %s795_s4 }
 0x1a8   : > { %p550_p10 = scmp.lt.s32.totalorder %s548_s10, %s544_s8 }
 0x1a9   : > { %p546_p7 = pnand %p545_p4, %p658_p5 }
 0x1aa   : > { %p551_p11 = por %p550_p10, %p549_p9 }
 0x1ab   : > { %p547_p8 = pneg %p546_p7 }
 0x1ad   : > { %p552_p12 = pnand %p551_p11, %p547_p8 }
 0x1af   : > { %555 = shalt.err (!%p552_p12)
}
 0x1b0   : > { %s593_s13 = smov 128   ;;  %s594_s14 = smov 8  }
 0x1b1   : > { %485 = dma.vmem_to_hbm [thread:$0]  (%p658_p5), %s748_s23, 256, %s746_s29, %s751_s30, %s593_s13, %s593_s13, %s594_s14  }
 0x1b2 PF: > { %p491_p13 = scmp.ge.s32.totalorder %s590_s18, 2  ;;  %s370_s22 = sand.u32 1, %s578_s15  }
 0x1b3   : > { %s371_s27 = scalar_lea.sflag [#allocation3], %s370_s22 }
 0x1b4   : > { %p488_p0 = pnand %p491_p13, %p662_p6 }
 0x1b6   : > { %p489_p1 = pneg %p488_p0 }
 0x1b8   : > { %573 = dma.done.wait (%p489_p1), %s371_s27, 256  }
 0x1b9   : > { %575 = vsyncadd (%p489_p1), %s371_s27, 4294967040  ;;  %p14_p2 = scmp.ge.s32.totalorder %s645_s21, 4   ;;  %s798_s15 = smov %s582_s16 }
 0x1ba   : > { %s799_s16 = smov %s586_s17  ;;  %s800_s17 = smov %s656_s24 }
 0x1bb   : > { %s801_s18 = smov %s645_s21  ;;  %16 = sbr.rel (!%p14_p2) target bundleno = 3 (0x3), region = 71 }
 0x1c0   :  { %376 = vsyncpa [#allocation3], 1 }
 0x1c1   :  { %378 = vsyncpa [#allocation3 + $0x1], 1 }

</bundles_post_ra>
